<compile_context>
chip_gen: v5e
topology: v5e:2x2
jax: 0.10.0
libtpu: 0.0.40
codegen_flags: <defaults>
</compile_context>

<pallas_src>
import functools
import math

import jax
import jax.numpy as jnp
from jax import lax
from jax.experimental import pallas as pl
from jax.experimental.pallas import tpu as pltpu


def _pqk_kernel(qk_ref, qb_ref, z_ref, out_ref):
    # qk_ref : [kp, d]      scale-folded, batch-invariant
    # qb_ref : [kp, 1]      scale-folded bias term
    # z_ref  : [1, TN, d]   current (batch, seq-tile) of z
    # out_ref: [1, kp, TN]
    s = lax.dot_general(
        qk_ref[...], z_ref[0],
        dimension_numbers=(((1,), (1,)), ((), ())),   # contract d vs d, no .T
        preferred_element_type=jnp.float32)            # [kp, TN]
    out_ref[0] = (s + qb_ref[...]).astype(out_ref.dtype)


def pooling_query_key_block(z, seed, wq_t, bq, wk_t, bk, *, h, tile_n=512):
    """z: [b, n, d]; seed: [k, d]; wq_t/wk_t: [d_in, d_out] (pre-transposed);
    bq/bk: [d].  Returns [b, k, n], matching PoolingQueryKeyBlock.forward.
    """
    b, n, d = z.shape
    k = seed.shape[0]
    p = d // h
    scale = 1.0 / (h * math.sqrt(p))

    # --- batch-invariant fold (wrapper side, computed once, f32) ----------
    #   out[b] = scale * (seed@Wq_t + bq) @ (z[b]@Wk_t + bk)^T
    #          = [scale*(q @ Wk_t^T)] @ z[b]^T + scale*(q @ bk)
    q = (seed.astype(jnp.float32) @ wq_t.astype(jnp.float32)
         + bq.astype(jnp.float32))                                    # [k, d]
    qk = (scale * (q @ wk_t.astype(jnp.float32).T)).astype(z.dtype)   # [k, d]
    qb = (scale * (q @ bk.astype(jnp.float32))).reshape(k, 1)         # [k, 1]

    # Pad k to the f32 sublane minimum so output stores are unmasked.
    kp = max(k, 8)
    if kp != k:
        qk = jnp.pad(qk, ((0, kp - k), (0, 0)))
        qb = jnp.pad(qb, ((0, kp - k), (0, 0)))
    qb = qb.astype(jnp.float32)

    # Sequence tiling: full n for small inputs, else 512 (multiple of 128).
    tn = n if n <= tile_n else tile_n
    grid = (b, pl.cdiv(n, tn))

    out = pl.pallas_call(
        _pqk_kernel,
        out_shape=jax.ShapeDtypeStruct((b, kp, n), z.dtype),
        grid_spec=pltpu.PrefetchScalarGridSpec(
            num_scalar_prefetch=0,
            grid=grid,
            in_specs=[
                pl.BlockSpec((kp, d), lambda i, j: (0, 0)),        # qk (resident)
                pl.BlockSpec((kp, 1), lambda i, j: (0, 0)),        # qb (resident)
                pl.BlockSpec((1, tn, d), lambda i, j: (i, j, 0)),  # z tile
            ],
            out_specs=pl.BlockSpec((1, kp, tn), lambda i, j: (i, 0, j)),
        ),
        compiler_params=pltpu.CompilerParams(
            dimension_semantics=("parallel", "parallel")),
    )(qk, qb, z)

    if kp != k:
        out = out[:, :k, :]
    return out


def _reference(z, seed, wq_t, bq, wk_t, bk, *, h):
    """Plain-JAX reference mirroring the PyTorch per-head computation."""
    b, n, d = z.shape
    k = seed.shape[0]
    p = d // h
    s = jnp.broadcast_to(seed[None], (b, k, d))
    q = s @ wq_t + bq            # [b, k, d]
    kk = z @ wk_t + bk           # [b, n, d]
    qh = q.reshape(b, k, h, p).transpose(2, 0, 1, 3)   # [h, b, k, p]
    kh = kk.reshape(b, n, h, p).transpose(2, 0, 1, 3)  # [h, b, n, p]
    att = jnp.einsum("hbkp,hbnp->hbkn", qh, kh) / math.sqrt(p)
    return att.transpose(1, 2, 0, 3).mean(axis=2)      # [b, k, n]


if __name__ == "__main__":
    # Small shapes consistent with the module: b=2, n=16, d=32, h=4, k=8.
    b, n, d, h, k = 2, 16, 32, 4, 8

    key = jax.random.PRNGKey(0)
    kz, ks, kwq, kbq, kwk, kbk = jax.random.split(key, 6)

    z = jax.random.normal(kz, (b, n, d), dtype=jnp.float32)
    seed = jax.random.normal(ks, (k, d), dtype=jnp.float32)  # seed_vectors [1,k,d] squeezed
    # nn.Linear(d, d): weight [d_out, d_in], bias [d_out]; init deterministically.
    lim = 1.0 / math.sqrt(d)
    wq = jax.random.uniform(kwq, (d, d), minval=-lim, maxval=lim, dtype=jnp.float32)
    bq = jax.random.uniform(kbq, (d,), minval=-lim, maxval=lim, dtype=jnp.float32)
    wk = jax.random.uniform(kwk, (d, d), minval=-lim, maxval=lim, dtype=jnp.float32)
    bk = jax.random.uniform(kbk, (d,), minval=-lim, maxval=lim, dtype=jnp.float32)

    # Pass weights pre-transposed ([d_in, d_out]) so wrapper does x @ W_t + b.
    out = pooling_query_key_block(z, seed, wq.T, bq, wk.T, bk, h=h)
    out = jax.block_until_ready(out)

    ref = _reference(z, seed, wq.T, bq, wk.T, bk, h=h)
    assert out.shape == (b, k, n)
    assert jnp.allclose(out, ref, atol=1e-4, rtol=1e-4), (
        float(jnp.max(jnp.abs(out - ref))))

    print("KERNEL_OK")
</pallas_src>

<mosaic_0001>
module attributes {stable_mosaic.version = 11 : i64} {
  func.func @_pqk_kernel(%arg0: i32, %arg1: i32, %arg2: memref<8x32xf32, #tpu.memory_space<vmem>>, %arg3: memref<8x1xf32, #tpu.memory_space<vmem>>, %arg4: memref<1x16x32xf32, #tpu.memory_space<vmem>>, %arg5: memref<1x8x16xf32, #tpu.memory_space<vmem>>) attributes {dimension_semantics = [#tpu.dimension_semantics<parallel>, #tpu.dimension_semantics<parallel>], iteration_bounds = array<i64: 2, 1>, scalar_prefetch = 0 : i64, scratch_operands = 0 : i64, tpu.core_type = #tpu.core_type<tc>, window_params = [{pipeline_mode = #tpu.pipeline_mode<synchronous>, transform_indices = @transform_0, window_bounds = array<i64: 8, 32>}, {pipeline_mode = #tpu.pipeline_mode<synchronous>, transform_indices = @transform_1, window_bounds = array<i64: 8, 1>}, {transform_indices = @transform_2, window_bounds = array<i64: 1, 16, 32>}, {transform_indices = @transform_3, window_bounds = array<i64: 1, 8, 16>}]} {
    %c0 = arith.constant 0 : index
    %c0_0 = arith.constant 0 : index
    %0 = vector.load %arg2[%c0, %c0_0] : memref<8x32xf32, #tpu.memory_space<vmem>>, vector<8x32xf32>
    %c0_1 = arith.constant 0 : index
    %c0_2 = arith.constant 0 : index
    %c0_3 = arith.constant 0 : index
    %1 = vector.load %arg4[%c0_1, %c0_2, %c0_3] : memref<1x16x32xf32, #tpu.memory_space<vmem>>, vector<1x16x32xf32>
    %2 = vector.shape_cast %1 : vector<1x16x32xf32> to vector<16x32xf32>
    %cst = arith.constant dense<0.000000e+00> : vector<8x16xf32>
    %3 = tpu.matmul %0, %2, %cst {dimension_numbers = #tpu.dot_dimension_numbers<[1], [1], [0], [0], [0, 0, 1, 0], [], []>} : vector<8x32xf32>, vector<16x32xf32>, vector<8x16xf32> -> vector<8x16xf32>
    %c0_4 = arith.constant 0 : index
    %c0_5 = arith.constant 0 : index
    %4 = vector.load %arg3[%c0_4, %c0_5] : memref<8x1xf32, #tpu.memory_space<vmem>>, vector<8x1xf32>
    %5 = vector.broadcast %4 : vector<8x1xf32> to vector<8x16xf32>
    %6 = arith.addf %3, %5 : vector<8x16xf32>
    %c0_6 = arith.constant 0 : index
    %c0_7 = arith.constant 0 : index
    %c0_8 = arith.constant 0 : index
    %7 = vector.load %arg5[%c0_6, %c0_7, %c0_8] : memref<1x8x16xf32, #tpu.memory_space<vmem>>, vector<1x8x16xf32>
    %8 = vector.shape_cast %7 : vector<1x8x16xf32> to vector<8x16xf32>
    %9 = vector.shape_cast %6 : vector<8x16xf32> to vector<1x8x16xf32>
    tpu.vector_store %arg5[%c0_6, %c0_7, %c0_8], %9 {strides = array<i32>} : memref<1x8x16xf32, #tpu.memory_space<vmem>>, vector<1x8x16xf32>,
    return
  }
  func.func @transform_0(%arg0: i32, %arg1: i32) -> (i32, i32) {
    %c0_i32 = arith.constant 0 : i32
    %c0_i32_0 = arith.constant 0 : i32
    %c0_i32_1 = arith.constant 0 : i32
    return %c0_i32, %c0_i32_0 : i32, i32
  }
  func.func @transform_1(%arg0: i32, %arg1: i32) -> (i32, i32) {
    %c0_i32 = arith.constant 0 : i32
    %c0_i32_0 = arith.constant 0 : i32
    %c0_i32_1 = arith.constant 0 : i32
    return %c0_i32, %c0_i32_0 : i32, i32
  }
  func.func @transform_2(%arg0: i32, %arg1: i32) -> (i32, i32, i32) {
    %c0_i32 = arith.constant 0 : i32
    %c0_i32_0 = arith.constant 0 : i32
    return %arg0, %arg1, %c0_i32 : i32, i32, i32
  }
  func.func @transform_3(%arg0: i32, %arg1: i32) -> (i32, i32, i32) {
    %c0_i32 = arith.constant 0 : i32
    %c0_i32_0 = arith.constant 0 : i32
    return %arg0, %c0_i32, %arg1 : i32, i32, i32
  }
}

</mosaic_0001>

<bundles_post_ra>
// kernel: tpu_custom_call.1
= control target key start
LH: loop header
LB: loop body
LE: loop exit
PB: predicated region body
PF: predicated region fallthrough
CT: control target
= control target key end

     0   :  { %8 = vsyncpa [#allocation3], 0  ;;  %s698_s0 = inlined_call_operand.vmem [shape: f32[8,32], index: 0, kind: input, shape index: {}]   ;;  %s699_s1 = inlined_call_operand.vmem [shape: f32[8,1], index: 1, kind: input, shape index: {}]   ;;  %s700_s2 = inlined_call_operand.hbm [shape: f32[2,16,32], index: 2, kind: input, shape index: {}]   ;;  %s701_s3 = inlined_call_operand.hbm [shape: f32[2,8,16], index: 3, kind: output, shape index: {}]  }
   0x1   :  { %10 = vsyncpa [#allocation3 + $0x1], 0 }
   0x2   :  { %11 = vsyncpa [#allocation4], 0 }
   0x3   :  { %13 = vsyncpa [#allocation4 + $0x1], 0  ;;  %s571_s12 = smov 0   ;;  %s573_s13 = smov 0  }
   0x4   :  { %s575_s14 = smov 0   ;;  %s577_s15 = smov 0  }
   0x5   :  { %s579_s16 = smov 0   ;;  %s581_s17 = smov 0  }
   0x6 LB: > { %s350_s18 = sadd.s32 4294967295, %s546_s17   ;;  %s351_s19 = sadd.s32 4294967294, %s546_s17   ;;  %s546_s17 = sphi %s581_s17, %s19_s17   ;;  %s542_s16 = sphi %s579_s16, %s710_s16   ;;  %s538_s15 = sphi %s577_s15, %s709_s15   ;;  %s534_s14 = sphi %s575_s14, %s708_s14   ;;  %s530_s13 = sphi %s573_s13, %s707_s13   ;;  %s526_s12 = sphi %s571_s12, %s706_s12  }
   0x7   : > { %s31_s20 = sadd.s32 1, %s542_s16  ;;  %s82_s21 = sadd.s32 1, %s534_s14 }
   0x8   : > { %p33_p0 = scmp.ge.s32.totalorder %s31_s20, 2  ;;  %p89_p1 = scmp.ne.s32.totalorder %s534_s14, %s530_s13 }
   0x9   : > { %p90_p2 = scmp.eq.s32.totalorder %s546_s17, 0  ;;  %p95_p3 = scmp.ne.s32.totalorder %s530_s13, %s526_s12 }
   0xa   : > { %s712_s20 = smov (%p33_p0, %s31_s20), 0  ;;  %p96_p5 = scmp.eq.s32.totalorder %s350_s18, 0 }
   0xb   : > { %p612_p4 = por %p90_p2, %p89_p1  ;;  %s77_s23 = ssub.s32 %s542_s16, %s712_s20 }
   0xc   : > { %p121_p6 = scmp.eq.s32.totalorder %s350_s18, 1  ;;  %p80_p7 = scmp.eq.s32.totalorder %s77_s23, 0 }
   0xd   : > { %p618_p8 = por %p96_p5, %p95_p3  ;;  %p127_p10 = scmp.eq.s32.totalorder %s351_s19, 1 }
   0xe   : > { %p622_p9 = por %p121_p6, %p89_p1  ;;  %p353_p12 = scmp.ge.s32.totalorder %s546_s17, 2 }
   0xf   : > { %s627_s26 = scalar_select %p80_p7, %s534_s14, %s82_s21  }
  0x10   : > { %p629_p11 = por %p127_p10, %p95_p3  ;;  %p380_p13 = scmp.lt.s32.totalorder %s546_s17, 2 }
  0x11   : > { %s153_s28 = sand.u32 1, %s534_s14   ;;  %s367_s30 = sshll.u32 %s542_s16, 4 }
  0x12   : > { %s354_s29 = sshll.u32 %s153_s28, 4  ;;  %s164_s6 = scalar_lea.hbm %s700_s2, %s367_s30 }
  0x13   : > { %s157_s7 = scalar_lea.vmem [#allocation2], %s354_s29  ;;  %s165_s9 = sshll.u32 %s164_s6, 4  ;;  %s166_s9 = int_to_ptr.hbm [resolvable:$true] %s165_s9 }
  0x14   : > { %s167_s8 = sshll.u32 %s157_s7, 4  ;;  %p373_p0 = pnand %p380_p13, %p612_p4  ;;  %s168_s8 = int_to_ptr.vmem [resolvable:$true] %s167_s8 }
  0x15   : > { %p357_p1 = scmp.ge.s32.totalorder %s546_s17, 1  ;;  %s154_s10 = scalar_lea.sflag [#allocation3], %s153_s28 }
  0x16   : > { %s548_s11 = smov 128   ;;  %s549_s18 = smov 8  }
  0x17   : > { %375 = dma.hbm_to_vmem [thread:$0]  (!%p373_p0), %s166_s9, 256, %s168_s8, %s154_s10, %s548_s11, %s548_s11, %s549_s18  }
  0x18   : > { %p175_p2 = scmp.lt.s32.totalorder %s546_s17, 3 }
  0x1a   : > { %p176_p3 = pnand %p357_p1, %p175_p2 }
  0x1b   : > { %s645_s19 = sand.u32 (!%p176_p3), 1, %s530_s13  }
  0x1c   : > { %179 = sbr.rel (%p176_p3) target bundleno = 173 (0xad), region = 32  ;;  %s358_s21 = sshll.u32 (!%p176_p3), %s645_s19, 4 }
  0x1d   : > { %s182_s23 = scalar_lea.sflag (!%p176_p3), [#allocation3], %s645_s19  ;;  %s185_s29 = scalar_lea.vmem (!%p176_p3), [#allocation2], %s358_s21 }
  0x21   : > { %517 = dma.done.wait (%p618_p8), %s182_s23, 256  }
  0x22   : > { %519 = vsyncadd (%p618_p8), %s182_s23, 4294967040  ;;  %v550_v0 = vmov 0   ;;  %vm219_vm0 = vcmask 261120   ;;  %v212_v1 = vld [vmem:[%s185_s29 + $0x8] sm:$0xff]  ;;  %v213_v2 = vld [vmem:[%s699_s1] sm:$0xff]  ;;  %s359_s24 = sshll.u32 %s645_s19, 3 }
  0x23   : > { %433 = vset.pattern.permute.xlu0 %v550_v0  ;;  %360 = vmatpush.xpose.msk.msra.mxu0 %vm219_vm0, %v212_v1  ;;  %v211_v3 = vld [vmem:[%s185_s29] sm:$0xff]  ;;  %s364_s5 = sshll.u32 %s538_s15, 3  ;;  %s208_s9 = scalar_lea.vmem [#allocation5], %s359_s24  ;;  %vm249_vm1 = vcmask 130048  }
  0x24   : > { %216 = vperm.xlu0 %433, %v213_v2   ;;  %v210_v4 = vld [vmem:[%s698_s0] sm:$0xff]  ;;  %s263_s8 = scalar_lea.hbm %s701_s3, %s364_s5  ;;  %s265_s10 = sshll.u32 %s208_s9, 4  ;;  %s266_s10 = int_to_ptr.vmem [resolvable:$true] %s265_s10 }
  0x25   : > { %s267_s11 = sshll.u32 %s263_s8, 4  ;;  %s252_s18 = scalar_lea.sflag [#allocation4], %s645_s19  ;;  %s268_s11 = int_to_ptr.hbm [resolvable:$true] %s267_s11 }
  0x26   : > { %s478_s21 = sshra.s32 %s268_s11, 4  ;;  %s484_s22 = scalar_lea.hbm %s701_s3, 16  ;;  %s479_s21 = int_to_ptr.hbm [resolvable:$true] %s478_s21 }
  0x27   : > { %361 = vmatpush.xpose.msk.msra.mxu0 %vm219_vm0, %v211_v3  ;;  %s480_s23 = scalar_lea.hbm %s479_s21, 8  ;;  %p485_p7 = scmp.lt.s32.totalorder %s479_s21, %s701_s3 }
  0x28   : > { %p481_p4 = scmp.ne.s32.totalorder %s479_s21, %s480_s23  ;;  %p486_p8 = scmp.lt.s32.totalorder %s484_s22, %s480_s23 }
  0x2a   : > { %362 = vmatmul.msk.f32.vlgmr.msra.gmra.mxu0 %vm219_vm0, %v210_v4  ;;  %p482_p5 = pnand %p481_p4, %p622_p9  ;;  %p487_p10 = por %p486_p8, %p485_p7 }
  0x2c   : > { %p483_p6 = pneg %p482_p5 }
  0x2e   : > { %p488_p13 = pnand %p487_p10, %p483_p6 }
  0x96   : > { %v217_v5 = vpop.permute.xlu0 %216 }
  0xa7   : > { %v246_v6 = vpop.f32.mrf.mxu0 }
  0xa8   : > { %v247_v7 = vadd.f32 %v246_v6, %v217_v5 }
  0xaa   : > { %250 = vst.msk [vmem:[%s208_s9] sm:$0xff] %vm249_vm1, %v247_v7 }
  0xab   : > { %491 = shalt.err (!%p488_p13)
}
  0xac   : > { %370 = dma.vmem_to_hbm [thread:$0]  (%p622_p9), %s266_s10, 128, %s268_s11, %s252_s18  }
  0xad PF: > { %s279_s19 = sand.u32 1, %s526_s12   ;;  %p377_p0 = pnand %p353_p12, %p629_p11 }
  0xae   : > { %s280_s4 = scalar_lea.sflag [#allocation4], %s279_s19 }
  0xaf   : > { %p378_p1 = pneg %p377_p0 }
  0xb1   : > { %521 = dma.done.wait (%p378_p1), %s280_s4, 128  }
  0xb2   : > { %523 = vsyncadd (%p378_p1), %s280_s4, 4294967168  ;;  %s19_s17 = sadd.s32 1, %s546_s17   ;;  %s706_s12 = smov %s530_s13 }
  0xb3   : > { %p16_p2 = scmp.ge.s32.totalorder %s19_s17, 4   ;;  %s707_s13 = smov %s534_s14 }
  0xb4   : > { %s708_s14 = smov %s627_s26  ;;  %s709_s15 = smov %s542_s16 }
  0xb5   : > { %s710_s16 = smov %s712_s20  ;;  %18 = sbr.rel (!%p16_p2) target bundleno = 6 (0x6), region = 77 }
  0xba   :  { %286 = vsyncpa [#allocation3], 1 }
  0xbb   :  { %288 = vsyncpa [#allocation3 + $0x1], 1 }
  0xbc   :  { %289 = vsyncpa [#allocation4], 1 }
  0xbd   :  { %291 = vsyncpa [#allocation4 + $0x1], 1 }

</bundles_post_ra>
